<compile_context>
chip_gen: v5e
topology: v5e:2x2
jax: 0.10.0
libtpu: 0.0.40
codegen_flags: <defaults>
</compile_context>

<pallas_src>
import functools
import math

import jax
import jax.numpy as jnp
from jax import lax
from jax.experimental import pallas as pl
from jax.experimental.pallas import tpu as pltpu

_MASK_VALUE = -1e30  # large negative; exp() underflows to exactly 0 after row-max subtraction


def _causal_attn_kernel(x_ref, w_ref, attn_ref, v_ref, qkv_ref, *, d_out, tq, scale):
    """Grid = (B, T // tq).
       x_ref    : (1, T, d_in)      full sequence of this batch element (resident across qi)
       w_ref    : (3*d_out, d_in)   fused [W_q; W_k; W_v] in PyTorch (out, in) layout
       attn_ref : (1, tq, T)        causally-normalized attention weights for this query tile
       v_ref    : (1, T, d_out)     value projection (resident across qi, written at qi == 0)
       qkv_ref  : (T, 3*d_out) VMEM fused QKV projection, carried across query tiles
    """
    qi = pl.program_id(1)
    T = x_ref.shape[1]

    # ---- fused QKV projection: one MXU pass per batch element (only at qi == 0) ----------
    @pl.when(qi == 0)
    def _():
        # contract d_in of x with d_in of the (3*d_out, d_in) weight -> (T, 3*d_out);
        # no weight transpose is ever materialized.
        qkv_ref[...] = lax.dot_general(
            x_ref[0], w_ref[...],
            dimension_numbers=(((1,), (1,)), ((), ())),
            preferred_element_type=jnp.float32,
        )
        # v does not depend on the query tile: write it once; the output block is resident
        # across qi and is written back to HBM when the batch index advances.
        v_ref[0] = qkv_ref[pl.ds(0, T), pl.ds(2 * d_out, d_out)].astype(v_ref.dtype)

    # ---- scores for this query tile -------------------------------------------------------
    row0 = pl.multiple_of(qi * tq, tq)
    # scale q (tq*d_out mults) instead of the (tq, T) score matrix
    q = qkv_ref[pl.ds(row0, tq), pl.ds(0, d_out)] * scale          # (tq, d_out)
    k = qkv_ref[pl.ds(0, T), pl.ds(d_out, d_out)]                  # (T, d_out)

    # q @ k^T without materializing k.T: contract the last dims on the MXU.
    s = lax.dot_general(
        q, k, dimension_numbers=(((1,), (1,)), ((), ())),
        preferred_element_type=jnp.float32,
    )                                                              # (tq, T)

    # ---- causal mask folded into a single softmax -----------------------------------------
    # softmax -> tril mask -> renormalize (PyTorch) == mask scores -> one softmax.
    rows = row0 + lax.broadcasted_iota(jnp.int32, (tq, T), 0)
    cols = lax.broadcasted_iota(jnp.int32, (tq, T), 1)
    s = jnp.where(cols <= rows, s, _MASK_VALUE)

    m = jnp.max(s, axis=-1, keepdims=True)
    e = jnp.exp(s - m)
    denom = jnp.sum(e, axis=-1, keepdims=True)
    attn = e * pl.reciprocal(denom, approx=True)   # EUP reciprocal, frees the VPU divide

    attn_ref[0] = attn.astype(attn_ref.dtype)


def _pick_tq(T, tq):
    """Largest query tile <= tq that divides T and is a multiple of 8 (else the full T)."""
    tq = min(tq, T)
    if T % tq == 0 and (tq % 8 == 0 or tq == T):
        return tq
    for cand in range(tq, 7, -1):
        if T % cand == 0 and cand % 8 == 0:
            return cand
    return T


def causal_attention_v1(x, W_q, W_k, W_v, *, tq=256):
    """x: (B, T, d_in); W_*: PyTorch-layout (d_out, d_in), bias=False.

    Returns (masked_norm_attn_weights (B, T, T), v (B, T, d_out)),
    matching CausalAttentionV1.forward.
    """
    B, T, d_in = x.shape
    d_out = W_q.shape[0]
    tq = _pick_tq(T, tq)
    num_q_tiles = T // tq
    scale = 1.0 / math.sqrt(d_out)

    # Fused QKV weight in the stored (out, in) layout -> no transposes in the hot path.
    w_qkv = jnp.concatenate([W_q, W_k, W_v], axis=0)               # (3*d_out, d_in)

    kernel = functools.partial(_causal_attn_kernel, d_out=d_out, tq=tq, scale=scale)

    attn, v = pl.pallas_call(
        kernel,
        out_shape=(
            jax.ShapeDtypeStruct((B, T, T), x.dtype),
            jax.ShapeDtypeStruct((B, T, d_out), x.dtype),
        ),
        grid=(B, num_q_tiles),
        in_specs=[
            # full sequence per batch element; constant over qi -> stays resident in VMEM
            pl.BlockSpec((1, T, d_in), lambda b, qi: (b, 0, 0)),
            pl.BlockSpec((3 * d_out, d_in), lambda b, qi: (0, 0)),
        ],
        out_specs=(
            pl.BlockSpec((1, tq, T), lambda b, qi: (b, qi, 0)),
            pl.BlockSpec((1, T, d_out), lambda b, qi: (b, 0, 0)),
        ),
        scratch_shapes=[pltpu.VMEM((T, 3 * d_out), jnp.float32)],
        # qi carries the fused QKV scratch across query tiles -> must be sequential
        # ("arbitrary"); B is "parallel" so e.g. v7x's 2 TensorCores split the batch axis.
        compiler_params=pltpu.CompilerParams(
            dimension_semantics=("parallel", "arbitrary"),
        ),
    )(x, w_qkv)
    return attn, v


def _reference(x, W_q, W_k, W_v):
    """Pure-JAX reference mirroring the PyTorch module, at highest matmul precision."""
    hp = lax.Precision.HIGHEST
    d_out = W_q.shape[0]
    q = jnp.einsum("btd,od->bto", x, W_q, precision=hp)
    k = jnp.einsum("btd,od->bto", x, W_k, precision=hp)
    v = jnp.einsum("btd,od->bto", x, W_v, precision=hp)
    s = jnp.einsum("bto,bso->bts", q, k, precision=hp) / math.sqrt(d_out)
    w = jax.nn.softmax(s, axis=-1)
    T = x.shape[1]
    tril = jnp.tril(jnp.ones((T, T), x.dtype))
    mw = w * tril
    attn = mw / jnp.sum(mw, axis=-1, keepdims=True)
    return attn, v


if __name__ == "__main__":
    def run_case(case_idx, B, T, d_in, d_out, tq):
        key = jax.random.fold_in(jax.random.PRNGKey(0), case_idx)
        kx, kq, kk, kv = jax.random.split(key, 4)
        bound = 1.0 / math.sqrt(d_in)
        x = jax.random.normal(kx, (B, T, d_in), dtype=jnp.float32)
        W_q = jax.random.uniform(kq, (d_out, d_in), jnp.float32, -bound, bound)
        W_k = jax.random.uniform(kk, (d_out, d_in), jnp.float32, -bound, bound)
        W_v = jax.random.uniform(kv, (d_out, d_in), jnp.float32, -bound, bound)

        attn, v = causal_attention_v1(x, W_q, W_k, W_v, tq=tq)
        jax.block_until_ready((attn, v))

        attn_ref, v_ref = _reference(x, W_q, W_k, W_v)
        attn_err = float(jnp.max(jnp.abs(attn - attn_ref)))
        v_err = float(jnp.max(jnp.abs(v - v_ref)))
        # attn uses the EUP approximate reciprocal (~2^-12 rel error), hence the looser bound.
        assert jnp.allclose(attn, attn_ref, atol=2e-3, rtol=2e-3), f"attn mismatch: {attn_err}"
        assert jnp.allclose(v, v_ref, atol=1e-4, rtol=1e-4), f"v mismatch: {v_err}"

    # small shape implied by the module (single query tile path)
    run_case(0, B=2, T=8, d_in=32, d_out=16, tq=256)
    # slightly larger shape that exercises the query-tiled path (T // tq == 2)
    run_case(1, B=2, T=256, d_in=64, d_out=64, tq=128)

    print("KERNEL_OK")
</pallas_src>

<mosaic_0001>
module attributes {stable_mosaic.version = 11 : i64} {
  func.func @_causal_attn_kernel(%arg0: i32, %arg1: i32, %arg2: memref<1x8x32xf32, #tpu.memory_space<vmem>>, %arg3: memref<48x32xf32, #tpu.memory_space<vmem>>, %arg4: memref<1x8x8xf32, #tpu.memory_space<vmem>>, %arg5: memref<1x8x16xf32, #tpu.memory_space<vmem>>, %arg6: memref<8x48xf32, #tpu.memory_space<vmem>>) attributes {dimension_semantics = [#tpu.dimension_semantics<parallel>, #tpu.dimension_semantics<arbitrary>], iteration_bounds = array<i64: 2, 1>, scalar_prefetch = 0 : i64, scratch_operands = 1 : i64, tpu.core_type = #tpu.core_type<tc>, window_params = [{transform_indices = @transform_0, window_bounds = array<i64: 1, 8, 32>}, {pipeline_mode = #tpu.pipeline_mode<synchronous>, transform_indices = @transform_1, window_bounds = array<i64: 48, 32>}, {transform_indices = @transform_2, window_bounds = array<i64: 1, 8, 8>}, {transform_indices = @transform_3, window_bounds = array<i64: 1, 8, 16>}]} {
    %c0_i32 = arith.constant 0 : i32
    %0 = arith.cmpi eq, %arg1, %c0_i32 : i32
    %1 = arith.extui %0 : i1 to i32
    %c0_i32_0 = arith.constant 0 : i32
    %2 = arith.cmpi ne, %1, %c0_i32_0 : i32
    scf.if %2 {
      %c0_9 = arith.constant 0 : index
      %c0_10 = arith.constant 0 : index
      %c0_11 = arith.constant 0 : index
      %31 = vector.load %arg2[%c0_9, %c0_10, %c0_11] : memref<1x8x32xf32, #tpu.memory_space<vmem>>, vector<1x8x32xf32>
      %32 = vector.shape_cast %31 : vector<1x8x32xf32> to vector<8x32xf32>
      %c0_12 = arith.constant 0 : index
      %c0_13 = arith.constant 0 : index
      %33 = vector.load %arg3[%c0_12, %c0_13] : memref<48x32xf32, #tpu.memory_space<vmem>>, vector<48x32xf32>
      %cst_14 = arith.constant dense<0.000000e+00> : vector<8x48xf32>
      %34 = tpu.matmul %32, %33, %cst_14 {dimension_numbers = #tpu.dot_dimension_numbers<[1], [1], [0], [0], [0, 0, 1, 0], [], []>} : vector<8x32xf32>, vector<48x32xf32>, vector<8x48xf32> -> vector<8x48xf32>
      %c0_15 = arith.constant 0 : index
      %c0_16 = arith.constant 0 : index
      %35 = vector.load %arg6[%c0_15, %c0_16] : memref<8x48xf32, #tpu.memory_space<vmem>>, vector<8x48xf32>
      tpu.vector_store %arg6[%c0_15, %c0_16], %34 {strides = array<i32>} : memref<8x48xf32, #tpu.memory_space<vmem>>, vector<8x48xf32>,
      %c0_17 = arith.constant 0 : index
      %c32 = arith.constant 32 : index
      %36 = vector.load %arg6[%c0_17, %c32] : memref<8x48xf32, #tpu.memory_space<vmem>>, vector<8x16xf32>
      %c0_18 = arith.constant 0 : index
      %c0_19 = arith.constant 0 : index
      %c0_20 = arith.constant 0 : index
      %37 = vector.load %arg5[%c0_18, %c0_19, %c0_20] : memref<1x8x16xf32, #tpu.memory_space<vmem>>, vector<1x8x16xf32>
      %38 = vector.shape_cast %37 : vector<1x8x16xf32> to vector<8x16xf32>
      %39 = vector.shape_cast %36 : vector<8x16xf32> to vector<1x8x16xf32>
      tpu.vector_store %arg5[%c0_18, %c0_19, %c0_20], %39 {strides = array<i32>} : memref<1x8x16xf32, #tpu.memory_space<vmem>>, vector<1x8x16xf32>,
    } else {
    }
    %c8_i32 = arith.constant 8 : i32
    %3 = arith.muli %arg1, %c8_i32 : i32
    %4 = tpu.assume_multiple %3, 8 : i32
    %5 = arith.index_cast %4 : i32 to index
    %c0 = arith.constant 0 : index
    %6 = vector.load %arg6[%5, %c0] : memref<8x48xf32, #tpu.memory_space<vmem>>, vector<8x16xf32>
    %cst = arith.constant 2.500000e-01 : f32
    %7 = vector.broadcast %cst : f32 to vector<8x16xf32>
    %8 = arith.mulf %6, %7 : vector<8x16xf32>
    %c0_1 = arith.constant 0 : index
    %c16 = arith.constant 16 : index
    %9 = vector.load %arg6[%c0_1, %c16] : memref<8x48xf32, #tpu.memory_space<vmem>>, vector<8x16xf32>
    %cst_2 = arith.constant dense<0.000000e+00> : vector<8x8xf32>
    %10 = tpu.matmul %8, %9, %cst_2 {dimension_numbers = #tpu.dot_dimension_numbers<[1], [1], [0], [0], [0, 0, 1, 0], [], []>} : vector<8x16xf32>, vector<8x16xf32>, vector<8x8xf32> -> vector<8x8xf32>
    %11 = tpu.iota {dimensions = array<i32: 0>} : vector<8x8xi32>
    %12 = vector.broadcast %4 : i32 to vector<8x8xi32>
    %13 = arith.addi %12, %11 : vector<8x8xi32>
    %14 = tpu.iota {dimensions = array<i32: 1>} : vector<8x8xi32>
    %15 = arith.cmpi sle, %14, %13 : vector<8x8xi32>
    %cst_3 = arith.constant -1.000000e+30 : f32
    %16 = vector.broadcast %cst_3 : f32 to vector<8x8xf32>
    %17 = arith.select %15, %10, %16 : vector<8x8xi1>, vector<8x8xf32>
    %cst_4 = arith.constant dense<0xFF800000> : vector<8xf32>
    %18 = vector.multi_reduction <maximumf>, %17, %cst_4 [1] : vector<8x8xf32> to vector<8xf32>
    %19 = vector.shape_cast %18 : vector<8xf32> to vector<8x1xf32>
    %20 = vector.broadcast %19 : vector<8x1xf32> to vector<8x8xf32>
    %21 = arith.subf %17, %20 : vector<8x8xf32>
    %22 = math.exp %21 : vector<8x8xf32>
    %cst_5 = arith.constant dense<0.000000e+00> : vector<8xf32>
    %23 = vector.multi_reduction <add>, %22, %cst_5 [1] : vector<8x8xf32> to vector<8xf32>
    %24 = vector.shape_cast %23 : vector<8xf32> to vector<8x1xf32>
    %25 = tpu.reciprocal %24 {approx = true} : vector<8x1xf32> -> vector<8x1xf32>
    %26 = vector.broadcast %25 : vector<8x1xf32> to vector<8x8xf32>
    %27 = arith.mulf %22, %26 : vector<8x8xf32>
    %c0_6 = arith.constant 0 : index
    %c0_7 = arith.constant 0 : index
    %c0_8 = arith.constant 0 : index
    %28 = vector.load %arg4[%c0_6, %c0_7, %c0_8] : memref<1x8x8xf32, #tpu.memory_space<vmem>>, vector<1x8x8xf32>
    %29 = vector.shape_cast %28 : vector<1x8x8xf32> to vector<8x8xf32>
    %30 = vector.shape_cast %27 : vector<8x8xf32> to vector<1x8x8xf32>
    tpu.vector_store %arg4[%c0_6, %c0_7, %c0_8], %30 {strides = array<i32>} : memref<1x8x8xf32, #tpu.memory_space<vmem>>, vector<1x8x8xf32>,
    return
  }
  func.func @transform_0(%arg0: i32, %arg1: i32) -> (i32, i32, i32) {
    %c0_i32 = arith.constant 0 : i32
    %c0_i32_0 = arith.constant 0 : i32
    %c0_i32_1 = arith.constant 0 : i32
    return %arg0, %c0_i32, %c0_i32_0 : i32, i32, i32
  }
  func.func @transform_1(%arg0: i32, %arg1: i32) -> (i32, i32) {
    %c0_i32 = arith.constant 0 : i32
    %c0_i32_0 = arith.constant 0 : i32
    %c0_i32_1 = arith.constant 0 : i32
    return %c0_i32, %c0_i32_0 : i32, i32
  }
  func.func @transform_2(%arg0: i32, %arg1: i32) -> (i32, i32, i32) {
    %c0_i32 = arith.constant 0 : i32
    %c0_i32_0 = arith.constant 0 : i32
    return %arg0, %arg1, %c0_i32 : i32, i32, i32
  }
  func.func @transform_3(%arg0: i32, %arg1: i32) -> (i32, i32, i32) {
    %c0_i32 = arith.constant 0 : i32
    %c0_i32_0 = arith.constant 0 : i32
    %c0_i32_1 = arith.constant 0 : i32
    return %arg0, %c0_i32, %c0_i32_0 : i32, i32, i32
  }
}

</mosaic_0001>

<bundles_post_ra>
// kernel: tpu_custom_call.1
= control target key start
LH: loop header
LB: loop body
LE: loop exit
PB: predicated region body
PF: predicated region fallthrough
CT: control target
= control target key end

     0   :  { %9 = vsyncpa [#allocation4], 0  ;;  %s816_s0 = inlined_call_operand.vmem [shape: f32[2,8,32], index: 0, kind: input, shape index: {}]   ;;  %s817_s1 = inlined_call_operand.vmem [shape: f32[48,32], index: 1, kind: input, shape index: {}]   ;;  %s818_s2 = inlined_call_operand.hbm [shape: f32[2,8,8], index: 2, kind: output, shape index: {0}]   ;;  %s819_s3 = inlined_call_operand.hbm [shape: f32[2,8,16], index: 3, kind: output, shape index: {1}]  }
   0x1   :  { %11 = vsyncpa [#allocation4 + $0x1], 0 }
   0x2   :  { %12 = vsyncpa [#allocation6], 0 }
   0x3   :  { %14 = vsyncpa [#allocation6 + $0x1], 0  ;;  %s670_s12 = smov 0   ;;  %s672_s13 = smov 0  }
   0x4   :  { %s674_s14 = smov 0   ;;  %s676_s15 = smov 0  }
   0x5   :  { %s678_s16 = smov 0   ;;  %s680_s17 = smov 0  }
   0x6 LB: > { %s447_s18 = sadd.s32 4294967295, %s646_s17   ;;  %s448_s19 = sadd.s32 4294967294, %s646_s17   ;;  %s646_s17 = sphi %s680_s17, %s20_s17   ;;  %s642_s16 = sphi %s678_s16, %s826_s16   ;;  %s638_s15 = sphi %s676_s15, %s825_s15   ;;  %s634_s14 = sphi %s674_s14, %s824_s14   ;;  %s630_s13 = sphi %s672_s13, %s823_s13   ;;  %s626_s12 = sphi %s670_s12, %s822_s12  }
   0x7   : > { %s32_s20 = sadd.s32 1, %s642_s16  ;;  %s88_s21 = sadd.s32 1, %s634_s14 }
   0x8   : > { %p34_p0 = scmp.ge.s32.totalorder %s32_s20, 2  ;;  %p98_p1 = scmp.ne.s32.totalorder %s634_s14, %s630_s13 }
   0x9   : > { %p99_p2 = scmp.eq.s32.totalorder %s447_s18, 1  ;;  %p104_p3 = scmp.ne.s32.totalorder %s630_s13, %s626_s12 }
   0xa   : > { %s828_s20 = smov (%p34_p0, %s32_s20), 0  ;;  %p105_p5 = scmp.eq.s32.totalorder %s448_s19, 1 }
   0xb   : > { %p710_p4 = por %p99_p2, %p98_p1  ;;  %s83_s23 = ssub.s32 %s642_s16, %s828_s20 }
   0xc   : > { %p451_p6 = scmp.ge.s32.totalorder %s646_s17, 1  ;;  %p86_p7 = scmp.eq.s32.totalorder %s83_s23, 0 }
   0xd   : > { %p717_p8 = por %p105_p5, %p104_p3  ;;  %p159_p9 = scmp.lt.s32.totalorder %s646_s17, 3 }
   0xe   : > { %s723_s25 = scalar_select %p86_p7, %s634_s14, %s88_s21  }
   0xf   : > { %p160_p10 = pnand %p451_p6, %p159_p9 }
  0x10   : > { %p187_p11 = scmp.lt.s32.totalorder (!%p160_p10), %s638_s15, 1  ;;  %s648_s26 = smov (!%p160_p10), 112  }
  0x11   : > { %163 = sbr.rel (%p160_p10) target bundleno = 697 (0x2b9), region = 28  ;;  %s649_s27 = smov (!%p160_p10), 96  }
  0x12   : > { %s760_s28 = sand.u32 (!%p160_p10), 1, %s630_s13   ;;  %s466_s29 = sshll.u32 (!%p160_p10), %s638_s15, 3 }
  0x13   : > { %s452_s30 = sshll.u32 (!%p160_p10), %s760_s28, 3  ;;  %s325_s6 = scalar_lea.hbm (!%p160_p10), %s818_s2, %s466_s29 }
  0x14   : > { %s329_s9 = sshll.u32 (!%p160_p10), %s325_s6, 4  ;;  %s556_s21 = scalar_lea.hbm (!%p160_p10), %s818_s2, 16  ;;  %s330_s9 = int_to_ptr.hbm [resolvable:$true] %s329_s9 }
  0x15   : > { %s550_s11 = sshra.s32 (!%p160_p10), %s330_s9, 4  ;;  %s551_s11 = int_to_ptr.hbm [resolvable:$true] %s550_s11 }
  0x16   : > { %v201_v0 = vld [vmem:[%s817_s1 + $0x28] sm:$0xff]  ;;  %vm202_vm0 = vcmask 261120   ;;  %v200_v1 = vld [vmem:[%s817_s1 + $0x20] sm:$0xff]  ;;  %v199_v2 = vld [vmem:[%s817_s1 + $0x18] sm:$0xff]  ;;  %s188_s7 = scalar_select %p187_p11, %s638_s15, 1  ;;  %vm244_vm1 = vcmask 392192   ;;  %v287_v11 = vlaneseq }
  0x17   : > { %455 = vmatpush.xpose.msk.msra.mxu0 %vm202_vm0, %v201_v0  ;;  %v198_v3 = vld [vmem:[%s817_s1 + $0x10] sm:$0xff]  ;;  %v197_v4 = vld [vmem:[%s817_s1 + $0x8] sm:$0xff]  ;;  %v196_v5 = vld [vmem:[%s817_s1] sm:$0xff]  ;;  %vm251_vm2 = vcmask 130048   ;;  %vm295_vm4 = vcmask 64512   ;;  %s552_s15 = scalar_lea.hbm %s551_s11, 8  ;;  %p557_p1 = scmp.lt.s32.totalorder %s551_s11, %s818_s2 }
  0x18   : > { %s454_s10 = sshll.u32 %s188_s7, 3  ;;  %v288_v12 = vshrl.u32 %v287_v11, 7  ;;  %v292_v13 = vand.u32 127, %v287_v11  ;;  %s179_s7 = scalar_lea.vmem [#allocation3], %s452_s30 }
  0x19   : > { %s190_s23 = scalar_lea.vmem %s816_s0, %s454_s10  ;;  %s327_s8 = sshll.u32 %s179_s7, 4  ;;  %s328_s8 = int_to_ptr.vmem [resolvable:$true] %s327_s8 }
  0x1a   : > { %v195_v6 = vld [vmem:[%s190_s23] sm:$0xff]  ;;  %vm293_vm3 = vcmp.le.s32.totalorder %v292_v13, %v288_v12  ;;  %s309_s10 = scalar_lea.sflag [#allocation4], %s760_s28  ;;  %p553_p12 = scmp.ne.s32.totalorder %s551_s11, %s552_s15 }
  0x1b   : > { %456 = vmatpush.xpose.msk.msra.mxu0 %vm202_vm0, %v200_v1  ;;  %p558_p2 = scmp.lt.s32.totalorder %s556_s21, %s552_s15 }
  0x1c   : > { %p554_p13 = pnand %p553_p12, %p710_p4 }
  0x1d   : > { %p559_p3 = por %p558_p2, %p557_p1 }
  0x1e   : > { %p555_p0 = pneg %p554_p13 }
  0x1f   : > { %457 = vmatpush.xpose.msk.msra.mxu0 %vm202_vm0, %v199_v2 }
  0x20   : > { %p560_p5 = pnand %p559_p3, %p555_p0 }
  0x23   : > { %458 = vmatpush.xpose.msk.msra.mxu0 %vm202_vm0, %v198_v3 }
  0x27   : > { %459 = vmatpush.xpose.msk.msra.mxu0 %vm202_vm0, %v197_v4 }
  0x2b   : > { %460 = vmatpush.xpose.msk.msra.mxu0 %vm202_vm0, %v196_v5 }
  0x2e   : > { %461 = vmatmul.msk.f32.vlgmr.msra.gmra.mxu0 %vm202_vm0, %v195_v6 }
  0xab   : > { %v241_v7 = vpop.f32.mrf.mxu0 }
  0xac   : > { %245 = vst.msk [vmem:[#allocation2] sm:$0xff] %vm244_vm1, %v241_v7 }
  0xb3   : > { %v257_v8 = vld [vmem:[#allocation2] sm:$0xff] }
  0xb4   : > { %259 = vrot.lane.b32.xlu0 %v257_v8, %s648_s26  ;;  %v256_v10 = vmul.f32 0.25, %v257_v8 }
 0x126   : > { %v260_v9 = vpop.permute.xlu0 %259 }
 0x127   : > { %462 = vmatpush.xpose.msk.msra.mxu1 %vm251_vm2, %v260_v9 }
 0x12a   : > { %463 = vmatmul.msk.f32.vlgmr.msra.gmra.mxu1 %vm251_vm2, %v256_v10 }
 0x1a7   : > { %v284_v14 = vpop.f32.mrf.mxu1 }
 0x1a8   : > { %v294_v15 = vsel %vm293_vm3, %v284_v14, -1e+30 }
 0x1a9   : > { %v296_v16 = vsel %vm295_vm4, %v294_v15, -inf }
 0x1aa   : > { %297 = vmax.xlane.f32.xlu0 %v296_v16 }
 0x21d   : > { %v298_v17 = vpop.xlane.xlu0 %297 }
 0x21e   : > { %v299_v18 = vsub.f32 %v294_v15, %v298_v17 }
 0x220   : > { %v300_v19 = vmul.f32 1.442695, %v299_v18 }
 0x222   : > { %532 = vpow2.f32 %v300_v19 }
 0x228   : > { %v533_v20 = vpop.eup %532 }
 0x229   : > { %v302_v21 = vsel %vm295_vm4, %v533_v20, 0.0 }
 0x22a   : > { %303 = vadd.xlane.f32.xlu1 %v302_v21 }
 0x243   : > { %248 = vrot.lane.b32.xlu1 %v257_v8, %s649_s27 }
 0x29d   : > { %v304_v22 = vpop.xlane.xlu1 %303 }
 0x29e   : > { %534 = vrcp.f32 %v304_v22 }
 0x2a4   : > { %v535_v23 = vpop.eup %534 }
 0x2a5   : > { %v306_v24 = vmul.f32 %v535_v23, %v533_v20 }
 0x2a7   : > { %307 = vst.msk [vmem:[%s179_s7] sm:$0xff] %vm295_vm4, %v306_v24 }
 0x2a8   : > { %563 = shalt.err (!%p560_p5)
}
 0x2a9   : > { %470 = dma.vmem_to_hbm [thread:$0]  (%p710_p4), %s328_s8, 128, %s330_s9, %s309_s10  }
 0x2aa   : > { %s339_s5 = scalar_lea.hbm %s819_s3, %s466_s29  ;;  %s186_s6 = scalar_lea.vmem [#allocation5], %s452_s30 }
 0x2ab   : > { %s341_s7 = sshll.u32 %s186_s6, 4  ;;  %s343_s18 = sshll.u32 %s339_s5, 4  ;;  %s342_s7 = int_to_ptr.vmem [resolvable:$true] %s341_s7  ;;  %s344_s18 = int_to_ptr.hbm [resolvable:$true] %s343_s18 }
 0x2ac   : > { %s314_s11 = scalar_lea.sflag [#allocation6], %s760_s28  ;;  %s578_s15 = sshra.s32 %s344_s18, 4  ;;  %s579_s15 = int_to_ptr.hbm [resolvable:$true] %s578_s15 }
 0x2ad   : > { %s580_s19 = scalar_lea.hbm %s579_s15, 8  ;;  %s584_s29 = scalar_lea.hbm %s819_s3, 16 }
 0x2ae   : > { %p581_p6 = scmp.ne.s32.totalorder %s579_s15, %s580_s19  ;;  %p585_p10 = scmp.lt.s32.totalorder %s579_s15, %s819_s3 }
 0x2af   : > { %p586_p11 = scmp.lt.s32.totalorder %s584_s29, %s580_s19 }
 0x2b0   : > { %p582_p7 = pnand %p581_p6, %p710_p4 }
 0x2b1   : > { %p587_p12 = por %p586_p11, %p585_p10 }
 0x2b2   : > { %p583_p9 = pneg %p582_p7 }
 0x2b4   : > { %p588_p13 = pnand %p587_p12, %p583_p9 }
 0x2b5   : > { %v249_v25 = vpop.permute.xlu1 %248 }
 0x2b6   : > { %252 = vst.msk [vmem:[%s186_s6] sm:$0xff] %vm251_vm2, %v249_v25 }
 0x2b7   : > { %591 = shalt.err (!%p588_p13)
}
 0x2b8   : > { %471 = dma.vmem_to_hbm [thread:$0]  (%p710_p4), %s342_s7, 128, %s344_s18, %s314_s11  }
 0x2b9 PF: > { %p481_p0 = scmp.ge.s32.totalorder %s646_s17, 2  ;;  %s355_s28 = sand.u32 1, %s626_s12  }
 0x2ba   : > { %s356_s21 = scalar_lea.sflag [#allocation4], %s355_s28 }
 0x2bb   : > { %p475_p1 = pnand %p481_p0, %p717_p8 }
 0x2bd   : > { %p476_p2 = pneg %p475_p1 }
 0x2bf   : > { %617 = dma.done.wait (%p476_p2), %s356_s21, 128  }
 0x2c0   : > { %619 = vsyncadd (%p476_p2), %s356_s21, 4294967168  ;;  %s366_s23 = scalar_lea.sflag [#allocation6], %s355_s28 }
 0x2c1   : > { %621 = dma.done.wait (%p476_p2), %s366_s23, 128  }
 0x2c2   : > { %623 = vsyncadd (%p476_p2), %s366_s23, 4294967168  ;;  %s20_s17 = sadd.s32 1, %s646_s17   ;;  %s822_s12 = smov %s630_s13 }
 0x2c3   : > { %p17_p3 = scmp.ge.s32.totalorder %s20_s17, 4   ;;  %s823_s13 = smov %s634_s14 }
 0x2c4   : > { %s824_s14 = smov %s723_s25  ;;  %s825_s15 = smov %s642_s16 }
 0x2c5   : > { %s826_s16 = smov %s828_s20  ;;  %19 = sbr.rel (!%p17_p3) target bundleno = 6 (0x6), region = 85 }
 0x2ca   :  { %372 = vsyncpa [#allocation4], 1 }
 0x2cb   :  { %374 = vsyncpa [#allocation4 + $0x1], 1 }
 0x2cc   :  { %375 = vsyncpa [#allocation6], 1 }
 0x2cd   :  { %377 = vsyncpa [#allocation6 + $0x1], 1 }

</bundles_post_ra>
